<compile_context>
chip_gen: v7x
topology: tpu7x:2x2x1
jax: 0.10.0
libtpu: 0.0.40
codegen_flags: <defaults>
</compile_context>

<pallas_src>
import functools

import jax
import jax.numpy as jnp
import numpy as np
from jax.experimental import pallas as pl
from jax.experimental.pallas import tpu as pltpu

_COMPUTE_DTYPE = jnp.bfloat16     # MXU operand dtype (accumulation stays f32)


def _round_up(x, m):
    return (x + m - 1) // m * m


# ------------------------------ kernel bodies -------------------------------

def _project_and_init(x1_ref, x2_ref, s1_ref, s2_ref, p1s, p2s, o_ref):
    """f == 0: count-sketch projections (cached in VMEM scratch) + output init."""
    p1s[...] = jnp.dot(x1_ref[0], s1_ref[...],
                       preferred_element_type=jnp.float32).astype(_COMPUTE_DTYPE)
    p2s[...] = jnp.dot(x2_ref[0], s2_ref[...],
                       preferred_element_type=jnp.float32).astype(_COMPUTE_DTYPE)
    o_ref[...] = jnp.zeros_like(o_ref)


def _spectrum_product(p1s, p2s, cf_ref, tf):
    """One frequency tile of rfft(p1) * rfft(p2) (complex product), in f32."""
    fb1 = jnp.dot(p1s[...], cf_ref[...], preferred_element_type=jnp.float32)
    fb2 = jnp.dot(p2s[...], cf_ref[...], preferred_element_type=jnp.float32)
    r1, i1 = fb1[:, :tf], fb1[:, tf:]
    r2, i2 = fb2[:, :tf], fb2[:, tf:]
    return r1 * r2 - i1 * i2, r1 * i2 + i1 * r2        # (HWp, tF) each


def _cbp_sum_kernel(x1_ref, x2_ref, s1_ref, s2_ref, cf_ref, bv_ref, o_ref,
                    p1s, p2s, *, tf):
    @pl.when(pl.program_id(1) == 0)
    def _():
        _project_and_init(x1_ref, x2_ref, s1_ref, s2_ref, p1s, p2s, o_ref)

    rp, ip = _spectrum_product(p1s, p2s, cf_ref, tf)
    # Spatial sum hoisted in front of the (linear) inverse DFT.  Reduce HWp
    # rows to 8 partial-sum rows (MXU-friendly M, bf16-packing aligned); the
    # final 8-row reduction is done in the wrapper on the (B, 8, Dp) output.
    prod = jnp.concatenate([rp, ip], axis=1)                 # (HWp, 2tF) f32
    hwp = prod.shape[0]
    prod = prod.reshape(hwp // 8, 8, 2 * tf).sum(axis=0)     # (8,   2tF) f32
    o_ref[0] += jnp.dot(prod.astype(_COMPUTE_DTYPE), bv_ref[...],
                        preferred_element_type=jnp.float32)  # (8, Dp)


def _cbp_full_kernel(x1_ref, x2_ref, s1_ref, s2_ref, cf_ref, bv_ref, o_ref,
                     p1s, p2s, *, tf):
    @pl.when(pl.program_id(1) == 0)
    def _():
        _project_and_init(x1_ref, x2_ref, s1_ref, s2_ref, p1s, p2s, o_ref)

    rp, ip = _spectrum_product(p1s, p2s, cf_ref, tf)
    prod = jnp.concatenate([rp, ip], axis=1).astype(_COMPUTE_DTYPE)
    o_ref[0] += jnp.dot(prod, bv_ref[...],
                        preferred_element_type=jnp.float32)  # (HWp, Dp)


# ----------------------------- parameter setup ------------------------------

def init_sketch_params(key, input_dim1, input_dim2, output_dim):
    """Deterministic equivalent of the module's sketch-matrix init (f32)."""
    k1, k2, k3, k4 = jax.random.split(key, 4)

    def sketch(kh, ks, c, d):
        rand_h = jax.random.randint(kh, (c,), 0, d)
        rand_s = (2 * jax.random.randint(ks, (c,), 0, 2) - 1).astype(jnp.float32)
        return jnp.zeros((c, d), jnp.float32).at[jnp.arange(c), rand_h].set(rand_s)

    return (sketch(k1, k2, input_dim1, output_dim),
            sketch(k3, k4, input_dim2, output_dim))


def _fused_dft_matrices(d, dp, fp, tf):
    """Real-DFT matrices for rfft / (irfft * d), fused (re|im) and F-tiled.

    CF (dp, nf*2*tf): column tile t = [cos | -sin] for that frequency range,
      so p @ CF_t = [Re rfft(p) | Im rfft(p)] restricted to tile t.
    BV (nf*2*tf, dp): row tile t = [w*cos ; -w*sin]; the Hermitian weights w
      fold the irfft 1/d against the * output_dim, so [Re prod | Im prod] @
      BV_t accumulates tile t's contribution of irfft(prod, n=d) * d.
    Padded rows/cols (>= d, >= F) are zero, hence numerically exact.
    """
    f = d // 2 + 1
    nf = fp // tf
    j = np.arange(d, dtype=np.float64)[:, None]
    k = np.arange(f, dtype=np.float64)[None, :]
    ang = 2.0 * np.pi * j * k / d                                   # (d, f)
    cr = np.zeros((dp, fp), np.float32); cr[:d, :f] = np.cos(ang)
    ci = np.zeros((dp, fp), np.float32); ci[:d, :f] = -np.sin(ang)
    w = np.full((f,), 2.0, np.float64)
    w[0] = 1.0
    if d % 2 == 0:
        w[-1] = 1.0
    br = np.zeros((fp, dp), np.float32); br[:f, :d] = w[:, None] * np.cos(ang.T)
    bi = np.zeros((fp, dp), np.float32); bi[:f, :d] = -w[:, None] * np.sin(ang.T)
    cf = np.stack([cr.reshape(dp, nf, tf), ci.reshape(dp, nf, tf)],
                  axis=2).reshape(dp, nf * 2 * tf)
    bv = np.stack([br.reshape(nf, tf, dp), bi.reshape(nf, tf, dp)],
                  axis=1).reshape(nf * 2 * tf, dp)
    return (jnp.asarray(cf).astype(_COMPUTE_DTYPE),
            jnp.asarray(bv).astype(_COMPUTE_DTYPE))


# --------------------------------- wrapper ----------------------------------

def compact_bilinear_pooling(x1_nchw, x2_nchw, sketch1, sketch2, output_dim,
                             sum_pool=True, *, freq_tile=256):
    B, C1, H, W = x1_nchw.shape
    _, C2, _, _ = x2_nchw.shape
    D = int(output_dim)
    F = D // 2 + 1
    HW = H * W

    HWp = _round_up(HW, 8)                    # sublane / MXU-M alignment
    Dp = _round_up(D, 128)                    # lane-dense projections & output
    tF = min(_round_up(freq_tile, 128), _round_up(F, 128))   # frequency tile
    Fp = _round_up(F, tF)
    nF = Fp // tF

    def prep(x, c):                           # NCHW -> (B, HWp, C) bf16
        x = jnp.transpose(x, (0, 2, 3, 1)).reshape(B, HW, c)
        x = jnp.pad(x, ((0, 0), (0, HWp - HW), (0, 0)))
        return x.astype(_COMPUTE_DTYPE)

    x1 = prep(x1_nchw, C1)
    x2 = prep(x2_nchw, C2)
    s1 = jnp.pad(sketch1, ((0, 0), (0, Dp - D))).astype(_COMPUTE_DTYPE)
    s2 = jnp.pad(sketch2, ((0, 0), (0, Dp - D))).astype(_COMPUTE_DTYPE)
    cf, bv = _fused_dft_matrices(D, Dp, Fp, tF)

    out_rows = 8 if sum_pool else HWp         # 8 partial-sum rows for sum_pool

    # VMEM budget from the chosen tiles (double-buffered pipelined operands,
    # resident f32 output block, projection scratch, live f32 intermediates),
    # with 2x headroom, clamped to values valid on every TPU generation.
    est = (2 * 2 * HWp * (C1 + C2)                      # x blocks (bf16, 2-buf)
           + 2 * 2 * (C1 + C2) * Dp                     # sketch matrices
           + 2 * 2 * 2 * Dp * 2 * tF                    # CF + BV tiles
           + 2 * 4 * out_rows * Dp                      # output block (f32)
           + 2 * 2 * HWp * Dp                           # p1/p2 scratch (bf16)
           + 8 * 4 * HWp * 2 * tF)                      # f32 temporaries
    vmem_limit = int(min(max(32 * 2**20, 2 * est), 56 * 2**20))

    # TODO(synk): when B == 1 on v7x, add a second "parallel" grid axis (e.g.
    # over Dp blocks) so both TensorCores are used.
    grid_spec = pltpu.PrefetchScalarGridSpec(
        num_scalar_prefetch=0,
        grid=(B, nF),                 # batch parallel, frequency tiles last
        in_specs=[
            pl.BlockSpec((1, HWp, C1), lambda b, f: (b, 0, 0)),
            pl.BlockSpec((1, HWp, C2), lambda b, f: (b, 0, 0)),
            pl.BlockSpec((C1, Dp), lambda b, f: (0, 0)),
            pl.BlockSpec((C2, Dp), lambda b, f: (0, 0)),
            pl.BlockSpec((Dp, 2 * tF), lambda b, f: (0, f)),
            pl.BlockSpec((2 * tF, Dp), lambda b, f: (f, 0)),
        ],
        out_specs=pl.BlockSpec((1, out_rows, Dp), lambda b, f: (b, 0, 0)),
        scratch_shapes=[pltpu.VMEM((HWp, Dp), _COMPUTE_DTYPE),
                        pltpu.VMEM((HWp, Dp), _COMPUTE_DTYPE)])

    kernel = _cbp_sum_kernel if sum_pool else _cbp_full_kernel
    out = pl.pallas_call(
        functools.partial(kernel, tf=tF),
        out_shape=jax.ShapeDtypeStruct((B, out_rows, Dp), jnp.float32),
        grid_spec=grid_spec,
        compiler_params=pltpu.CompilerParams(
            dimension_semantics=("parallel", "arbitrary"),
            vmem_limit_bytes=vmem_limit),
    )(x1, x2, s1, s2, cf, bv)

    if sum_pool:
        return out[:, :, :D].sum(axis=1)                 # (B, D)
    out = out[:, :HW, :D].reshape(B, H, W, D)
    # TODO(synk): if the consumer accepts NHWC (and bf16), skip this transpose
    # to halve store traffic on v5e.
    return jnp.transpose(out, (0, 3, 1, 2))              # NCHW, as the module


# -------------------------------- reference ---------------------------------

def reference(x1_nchw, x2_nchw, sketch1, sketch2, D, sum_pool=True):
    p1 = jnp.einsum('bchw,cd->bhwd', x1_nchw.astype(jnp.float32), sketch1)
    p2 = jnp.einsum('bchw,cd->bhwd', x2_nchw.astype(jnp.float32), sketch2)
    f1 = jnp.fft.rfft(p1, axis=-1)
    f2 = jnp.fft.rfft(p2, axis=-1)
    cbp = jnp.fft.irfft(f1 * f2, n=D, axis=-1) * D
    if sum_pool:
        return cbp.sum(axis=(1, 2))
    return jnp.transpose(cbp, (0, 3, 1, 2))


# ----------------------------------- main ------------------------------------

if __name__ == "__main__":
    B, C1, C2, H, W, D = 2, 8, 8, 8, 8, 16

    key = jax.random.PRNGKey(0)
    kx1, kx2, kp = jax.random.split(key, 3)
    x1 = jax.random.normal(kx1, (B, C1, H, W), jnp.float32)
    x2 = jax.random.normal(kx2, (B, C2, H, W), jnp.float32)
    S1, S2 = init_sketch_params(kp, C1, C2, D)

    def check(out, ref, tol=5e-2):
        out = np.asarray(out)
        ref = np.asarray(ref)
        atol = tol * max(1.0, float(np.max(np.abs(ref))))   # bf16-operand kernel
        np.testing.assert_allclose(out, ref, rtol=tol, atol=atol)

    # sum_pool=True (module default)
    out = jax.block_until_ready(
        compact_bilinear_pooling(x1, x2, S1, S2, D, sum_pool=True))
    check(out, reference(x1, x2, S1, S2, D, sum_pool=True))

    # sum_pool=False path (per-pixel CBP, NCHW output)
    out_full = jax.block_until_ready(
        compact_bilinear_pooling(x1, x2, S1, S2, D, sum_pool=False))
    check(out_full, reference(x1, x2, S1, S2, D, sum_pool=False))

    print("KERNEL_OK")
</pallas_src>

<mosaic_0001>
module attributes {stable_mosaic.version = 11 : i64} {
  func.func @_cbp_sum_kernel(%arg0: i32, %arg1: i32, %arg2: memref<1x64x8xbf16, #tpu.memory_space<vmem>>, %arg3: memref<1x64x8xbf16, #tpu.memory_space<vmem>>, %arg4: memref<8x128xbf16, #tpu.memory_space<vmem>>, %arg5: memref<8x128xbf16, #tpu.memory_space<vmem>>, %arg6: memref<128x256xbf16, #tpu.memory_space<vmem>>, %arg7: memref<256x128xbf16, #tpu.memory_space<vmem>>, %arg8: memref<1x8x128xf32, #tpu.memory_space<vmem>>, %arg9: memref<64x128xbf16, #tpu.memory_space<vmem>>, %arg10: memref<64x128xbf16, #tpu.memory_space<vmem>>) attributes {dimension_semantics = [#tpu.dimension_semantics<parallel>, #tpu.dimension_semantics<arbitrary>], iteration_bounds = array<i64: 2, 1>, scalar_prefetch = 0 : i64, scratch_operands = 2 : i64, tpu.core_type = #tpu.core_type<tc>, window_params = [{transform_indices = @transform_0, window_bounds = array<i64: 1, 64, 8>}, {transform_indices = @transform_1, window_bounds = array<i64: 1, 64, 8>}, {pipeline_mode = #tpu.pipeline_mode<synchronous>, transform_indices = @transform_2, window_bounds = array<i64: 8, 128>}, {pipeline_mode = #tpu.pipeline_mode<synchronous>, transform_indices = @transform_3, window_bounds = array<i64: 8, 128>}, {transform_indices = @transform_4, window_bounds = array<i64: 128, 256>}, {transform_indices = @transform_5, window_bounds = array<i64: 256, 128>}, {transform_indices = @transform_6, window_bounds = array<i64: 1, 8, 128>}]} {
    %c0_i32 = arith.constant 0 : i32
    %0 = arith.cmpi eq, %arg1, %c0_i32 : i32
    %1 = arith.extui %0 : i1 to i32
    %c0_i32_0 = arith.constant 0 : i32
    %2 = arith.cmpi ne, %1, %c0_i32_0 : i32
    scf.if %2 {
      %c0_19 = arith.constant 0 : index
      %c0_20 = arith.constant 0 : index
      %c0_21 = arith.constant 0 : index
      %31 = vector.load %arg2[%c0_19, %c0_20, %c0_21] : memref<1x64x8xbf16, #tpu.memory_space<vmem>>, vector<1x64x8xbf16>
      %32 = vector.shape_cast %31 : vector<1x64x8xbf16> to vector<64x8xbf16>
      %c0_22 = arith.constant 0 : index
      %c0_23 = arith.constant 0 : index
      %33 = vector.load %arg4[%c0_22, %c0_23] : memref<8x128xbf16, #tpu.memory_space<vmem>>, vector<8x128xbf16>
      %cst_24 = arith.constant dense<0.000000e+00> : vector<64x128xf32>
      %34 = tpu.matmul %32, %33, %cst_24 {dimension_numbers = #tpu.dot_dimension_numbers<[1], [0], [0], [1], [0, 0, 1, 1], [], []>} : vector<64x8xbf16>, vector<8x128xbf16>, vector<64x128xf32> -> vector<64x128xf32>
      %35 = arith.truncf %34 : vector<64x128xf32> to vector<64x128xbf16>
      %c0_25 = arith.constant 0 : index
      %c0_26 = arith.constant 0 : index
      %36 = vector.load %arg9[%c0_25, %c0_26] : memref<64x128xbf16, #tpu.memory_space<vmem>>, vector<64x128xbf16>
      tpu.vector_store %arg9[%c0_25, %c0_26], %35 {strides = array<i32>} : memref<64x128xbf16, #tpu.memory_space<vmem>>, vector<64x128xbf16>,
      %c0_27 = arith.constant 0 : index
      %c0_28 = arith.constant 0 : index
      %c0_29 = arith.constant 0 : index
      %37 = vector.load %arg3[%c0_27, %c0_28, %c0_29] : memref<1x64x8xbf16, #tpu.memory_space<vmem>>, vector<1x64x8xbf16>
      %38 = vector.shape_cast %37 : vector<1x64x8xbf16> to vector<64x8xbf16>
      %c0_30 = arith.constant 0 : index
      %c0_31 = arith.constant 0 : index
      %39 = vector.load %arg5[%c0_30, %c0_31] : memref<8x128xbf16, #tpu.memory_space<vmem>>, vector<8x128xbf16>
      %cst_32 = arith.constant dense<0.000000e+00> : vector<64x128xf32>
      %40 = tpu.matmul %38, %39, %cst_32 {dimension_numbers = #tpu.dot_dimension_numbers<[1], [0], [0], [1], [0, 0, 1, 1], [], []>} : vector<64x8xbf16>, vector<8x128xbf16>, vector<64x128xf32> -> vector<64x128xf32>
      %41 = arith.truncf %40 : vector<64x128xf32> to vector<64x128xbf16>
      %c0_33 = arith.constant 0 : index
      %c0_34 = arith.constant 0 : index
      %42 = vector.load %arg10[%c0_33, %c0_34] : memref<64x128xbf16, #tpu.memory_space<vmem>>, vector<64x128xbf16>
      tpu.vector_store %arg10[%c0_33, %c0_34], %41 {strides = array<i32>} : memref<64x128xbf16, #tpu.memory_space<vmem>>, vector<64x128xbf16>,
      %cst_35 = arith.constant 0.000000e+00 : f32
      %43 = vector.broadcast %cst_35 : f32 to vector<1x8x128xf32>
      %c0_36 = arith.constant 0 : index
      %c0_37 = arith.constant 0 : index
      %c0_38 = arith.constant 0 : index
      %44 = vector.load %arg8[%c0_36, %c0_37, %c0_38] : memref<1x8x128xf32, #tpu.memory_space<vmem>>, vector<1x8x128xf32>
      tpu.vector_store %arg8[%c0_36, %c0_37, %c0_38], %43 {strides = array<i32>} : memref<1x8x128xf32, #tpu.memory_space<vmem>>, vector<1x8x128xf32>,
    } else {
    }
    %c0 = arith.constant 0 : index
    %c0_1 = arith.constant 0 : index
    %3 = vector.load %arg9[%c0, %c0_1] : memref<64x128xbf16, #tpu.memory_space<vmem>>, vector<64x128xbf16>
    %c0_2 = arith.constant 0 : index
    %c0_3 = arith.constant 0 : index
    %4 = vector.load %arg6[%c0_2, %c0_3] : memref<128x256xbf16, #tpu.memory_space<vmem>>, vector<128x256xbf16>
    %cst = arith.constant dense<0.000000e+00> : vector<64x256xf32>
    %5 = tpu.matmul %3, %4, %cst {dimension_numbers = #tpu.dot_dimension_numbers<[1], [0], [0], [1], [0, 0, 1, 1], [], []>} : vector<64x128xbf16>, vector<128x256xbf16>, vector<64x256xf32> -> vector<64x256xf32>
    %c0_4 = arith.constant 0 : index
    %c0_5 = arith.constant 0 : index
    %6 = vector.load %arg10[%c0_4, %c0_5] : memref<64x128xbf16, #tpu.memory_space<vmem>>, vector<64x128xbf16>
    %c0_6 = arith.constant 0 : index
    %c0_7 = arith.constant 0 : index
    %7 = vector.load %arg6[%c0_6, %c0_7] : memref<128x256xbf16, #tpu.memory_space<vmem>>, vector<128x256xbf16>
    %cst_8 = arith.constant dense<0.000000e+00> : vector<64x256xf32>
    %8 = tpu.matmul %6, %7, %cst_8 {dimension_numbers = #tpu.dot_dimension_numbers<[1], [0], [0], [1], [0, 0, 1, 1], [], []>} : vector<64x128xbf16>, vector<128x256xbf16>, vector<64x256xf32> -> vector<64x256xf32>
    %9 = vector.extract_strided_slice %5 {offsets = [0, 0], sizes = [64, 128], strides = [1, 1]} : vector<64x256xf32> to vector<64x128xf32>
    %10 = vector.extract_strided_slice %5 {offsets = [0, 128], sizes = [64, 128], strides = [1, 1]} : vector<64x256xf32> to vector<64x128xf32>
    %11 = vector.extract_strided_slice %8 {offsets = [0, 0], sizes = [64, 128], strides = [1, 1]} : vector<64x256xf32> to vector<64x128xf32>
    %12 = vector.extract_strided_slice %8 {offsets = [0, 128], sizes = [64, 128], strides = [1, 1]} : vector<64x256xf32> to vector<64x128xf32>
    %13 = arith.mulf %9, %11 : vector<64x128xf32>
    %14 = arith.mulf %10, %12 : vector<64x128xf32>
    %15 = arith.subf %13, %14 : vector<64x128xf32>
    %16 = arith.mulf %9, %12 : vector<64x128xf32>
    %17 = arith.mulf %10, %11 : vector<64x128xf32>
    %18 = arith.addf %16, %17 : vector<64x128xf32>
    %19 = tpu.concatenate %15, %18 in 1 : vector<64x128xf32>, vector<64x128xf32> -> vector<64x256xf32>
    %20 = vector.shape_cast %19 : vector<64x256xf32> to vector<8x8x256xf32>
    %cst_9 = arith.constant dense<0.000000e+00> : vector<8x256xf32>
    %21 = vector.multi_reduction <add>, %20, %cst_9 [0] : vector<8x8x256xf32> to vector<8x256xf32>
    %c0_10 = arith.constant 0 : index
    %c0_11 = arith.constant 0 : index
    %c0_12 = arith.constant 0 : index
    %22 = vector.load %arg8[%c0_10, %c0_11, %c0_12] : memref<1x8x128xf32, #tpu.memory_space<vmem>>, vector<1x8x128xf32>
    %23 = vector.shape_cast %22 : vector<1x8x128xf32> to vector<8x128xf32>
    %24 = arith.truncf %21 : vector<8x256xf32> to vector<8x256xbf16>
    %c0_13 = arith.constant 0 : index
    %c0_14 = arith.constant 0 : index
    %25 = vector.load %arg7[%c0_13, %c0_14] : memref<256x128xbf16, #tpu.memory_space<vmem>>, vector<256x128xbf16>
    %cst_15 = arith.constant dense<0.000000e+00> : vector<8x128xf32>
    %26 = tpu.matmul %24, %25, %cst_15 {dimension_numbers = #tpu.dot_dimension_numbers<[1], [0], [0], [1], [0, 0, 1, 1], [], []>} : vector<8x256xbf16>, vector<256x128xbf16>, vector<8x128xf32> -> vector<8x128xf32>
    %27 = arith.addf %23, %26 : vector<8x128xf32>
    %c0_16 = arith.constant 0 : index
    %c0_17 = arith.constant 0 : index
    %c0_18 = arith.constant 0 : index
    %28 = vector.load %arg8[%c0_16, %c0_17, %c0_18] : memref<1x8x128xf32, #tpu.memory_space<vmem>>, vector<1x8x128xf32>
    %29 = vector.shape_cast %28 : vector<1x8x128xf32> to vector<8x128xf32>
    %30 = vector.shape_cast %27 : vector<8x128xf32> to vector<1x8x128xf32>
    tpu.vector_store %arg8[%c0_16, %c0_17, %c0_18], %30 {strides = array<i32>} : memref<1x8x128xf32, #tpu.memory_space<vmem>>, vector<1x8x128xf32>,
    return
  }
  func.func @transform_0(%arg0: i32, %arg1: i32) -> (i32, i32, i32) {
    %c0_i32 = arith.constant 0 : i32
    %c0_i32_0 = arith.constant 0 : i32
    %c0_i32_1 = arith.constant 0 : i32
    return %arg0, %c0_i32, %c0_i32_0 : i32, i32, i32
  }
  func.func @transform_1(%arg0: i32, %arg1: i32) -> (i32, i32, i32) {
    %c0_i32 = arith.constant 0 : i32
    %c0_i32_0 = arith.constant 0 : i32
    %c0_i32_1 = arith.constant 0 : i32
    return %arg0, %c0_i32, %c0_i32_0 : i32, i32, i32
  }
  func.func @transform_2(%arg0: i32, %arg1: i32) -> (i32, i32) {
    %c0_i32 = arith.constant 0 : i32
    %c0_i32_0 = arith.constant 0 : i32
    %c0_i32_1 = arith.constant 0 : i32
    return %c0_i32, %c0_i32_0 : i32, i32
  }
  func.func @transform_3(%arg0: i32, %arg1: i32) -> (i32, i32) {
    %c0_i32 = arith.constant 0 : i32
    %c0_i32_0 = arith.constant 0 : i32
    %c0_i32_1 = arith.constant 0 : i32
    return %c0_i32, %c0_i32_0 : i32, i32
  }
  func.func @transform_4(%arg0: i32, %arg1: i32) -> (i32, i32) {
    %c0_i32 = arith.constant 0 : i32
    %c0_i32_0 = arith.constant 0 : i32
    return %c0_i32, %arg1 : i32, i32
  }
  func.func @transform_5(%arg0: i32, %arg1: i32) -> (i32, i32) {
    %c0_i32 = arith.constant 0 : i32
    %c0_i32_0 = arith.constant 0 : i32
    return %arg1, %c0_i32 : i32, i32
  }
  func.func @transform_6(%arg0: i32, %arg1: i32) -> (i32, i32, i32) {
    %c0_i32 = arith.constant 0 : i32
    %c0_i32_0 = arith.constant 0 : i32
    %c0_i32_1 = arith.constant 0 : i32
    return %arg0, %c0_i32, %c0_i32_0 : i32, i32, i32
  }
}

</mosaic_0001>

<bundles_post_ra>
// kernel: tpu_custom_call.1
= control target key start
LH: loop header
LB: loop body
LE: loop exit
PB: predicated region body
PF: predicated region fallthrough
CT: control target
= control target key end

     0   :  { %11 = vsyncpa [#allocation5], 0  ;;  %s1783_s0 = inlined_call_operand.vmem [shape: bf16[2,64,8], index: 0, kind: input, shape index: {}]   ;;  %s1784_s1 = inlined_call_operand.vmem [shape: bf16[2,64,8], index: 1, kind: input, shape index: {}]   ;;  %s1785_s2 = inlined_call_operand.vmem [shape: bf16[8,128], index: 2, kind: input, shape index: {}]   ;;  %s1786_s3 = inlined_call_operand.vmem [shape: bf16[8,128], index: 3, kind: input, shape index: {}]   ;;  %s1787_s4 = inlined_call_operand.vmem [shape: bf16[128,256], index: 4, kind: input, shape index: {}]   ;;  %s1788_s5 = inlined_call_operand.hbm [shape: bf16[256,128], index: 5, kind: input, shape index: {}]   ;;  %s1789_s6 = inlined_call_operand.hbm [shape: f32[2,8,128], index: 6, kind: output, shape index: {}]  }
   0x1   :  { %12 = vsyncpa [#allocation6], 0 }
   0x2   :  { %14 = vsyncpa [#allocation6 + $0x1], 0  ;;  %s1568_s21 = smov 0   ;;  %s1570_s22 = smov 0  }
   0x3   :  { %s1572_s23 = smov 0   ;;  %s1574_s24 = smov 0  }
   0x4   :  { %s1576_s25 = smov 0   ;;  %s1578_s26 = smov 0  }
   0x5 LB: > { %s1177_s27 = sadd.s32 4294967295, %s1526_s26   ;;  %s1178_s28 = sadd.s32 4294967294, %s1526_s26   ;;  %s1526_s26 = sphi %s1578_s26, %s20_s26   ;;  %s1522_s25 = sphi %s1576_s25, %s1807_s25   ;;  %s1518_s24 = sphi %s1574_s24, %s1806_s24   ;;  %s1514_s23 = sphi %s1572_s23, %s1805_s23   ;;  %s1510_s22 = sphi %s1570_s22, %s1804_s22   ;;  %s1506_s21 = sphi %s1568_s21, %s1803_s21  }
   0x6   : > { %s32_s29 = sadd.s32 1, %s1522_s25  ;;  %s185_s30 = sadd.s32 1, %s1514_s23 }
   0x7   : > { %p34_p0 = scmp.ge.s32.totalorder %s32_s29, 2  ;;  %p195_p1 = scmp.ne.s32.totalorder %s1514_s23, %s1510_s22 }
   0x8   : > { %p196_p2 = scmp.eq.s32.totalorder %s1177_s27, 1  ;;  %p201_p3 = scmp.ne.s32.totalorder %s1510_s22, %s1506_s21 }
   0x9   : > { %s1809_s29 = smov (%p34_p0, %s32_s29), 0  ;;  %p202_p5 = scmp.eq.s32.totalorder %s1178_s28, 1 }
   0xa   : > { %p1608_p4 = por %p196_p2, %p195_p1  ;;  %s182_s8 = ssub.s32 %s1522_s25, %s1809_s29 }
   0xb   : > { %p1179_p6 = scmp.ge.s32.totalorder %s1526_s26, 1  ;;  %p183_p7 = scmp.eq.s32.totalorder %s182_s8, 0 }
   0xc   : > { %s1794_s7 = scalar_select %p1608_p4, 1, 0 }
   0xd   : > { %p1615_p8 = por %p202_p5, %p201_p3  ;;  %p209_p9 = scmp.lt.s32.totalorder %s1526_s26, 3 }
   0xe   : > { %s1621_s10 = scalar_select %p183_p7, %s1514_s23, %s185_s30  }
   0xf   : > { %s1795_s9 = scalar_select %p1615_p8, 1, 0 }
  0x10   : > { %p1623_p10 = pnand %p1179_p6, %p209_p9  ;;  %p1627_p11 = scmp.eq.s32.totalorder %s1177_s27, 0 }
  0x11   : > { %s1528_s13 = smov [#allocation4]   ;;  %s1416_s18 = scalar_lea.hbm %s1788_s5, 2048 }
  0x12   : > { %s1796_s11 = scalar_select %p1623_p10, 1, 0 }
  0x13   : > { %s1797_s12 = scalar_select %p1627_p11, 1, 0 }
  0x14   : > { %p1304_p12 = pneg %p1623_p10  ;;  %s239_s14 = sshll.u32 %s1528_s13, 4  ;;  %s240_s14 = int_to_ptr.vmem [resolvable:$true] %s239_s14 }
  0x15   : > { %p1417_p0 = scmp.ne.s32.totalorder %s1788_s5, %s1416_s18  ;;  %p1423_p5 = scmp.lt.u32.totalorder %s1416_s18, %s1788_s5 }
  0x16   : > { %p1635_p13 = pnand %p1627_p11, %p1304_p12 }
  0x18   : > { %p1418_p1 = pneg %p1635_p13 }
  0x1a   : > { %p1419_p2 = pnand %p1418_p1, %p1417_p0 }
  0x1c   : > { %p1420_p3 = pneg %p1419_p2 }
  0x1e   : > { %p1425_p6 = pnand %p1423_p5, %p1420_p3 }
  0x20   : > { %1428 = shalt.err (!%p1425_p6)
}
  0x21   : > { %s1429_s30 = scalar_lea.vmem %s240_s14, 2048  ;;  %p1437_p8 = scmp.lt.s32.totalorder %s240_s14, %s240_s14 }
  0x22   : > { %p1430_p7 = scmp.ne.s32.totalorder %s240_s14, %s1429_s30  ;;  %p1438_p4 = scmp.lt.s32.totalorder %s1429_s30, %s1429_s30 }
  0x24   : > { %p1432_p9 = pnand %p1430_p7, %p1418_p1  ;;  %p1439_p11 = por %p1438_p4, %p1437_p8 }
  0x26   : > { %p1433_p12 = pneg %p1432_p9 }
  0x28   : > { %p1440_p10 = pnand %p1439_p11, %p1433_p12 }
  0x2a   : > { %1443 = shalt.err (!%p1440_p10)
}
  0x2b   : > { %s1529_s8 = smov 64   ;;  %s1530_s13 = smov 4  }
  0x2c   : > { %1307 = dma.hbm_to_vmem [thread:$0]  (!%p1635_p13), %s1788_s5, 2048, %s240_s14, [#allocation5], %s1529_s8, %s1529_s8, %s1530_s13  }
  0x2d   : > { %p1799_p0 = scmp.ne.s32.totalorder %s1796_s11, 0 }
  0x2e   : > { %p1800_p2 = scmp.ne.s32.totalorder (!%p1799_p0), %s1797_s12, 0 }
  0x2f   : > { %271 = sbr.rel (%p1799_p0) target bundleno = 758 (0x2f6), region = 44 }
  0x36   : > { %1497 = dma.done.wait (%p1800_p2), [#allocation5], 2048  }
  0x37   : > { %1499 = vsyncadd (%p1800_p2), [#allocation5], 4294965248  ;;  %p311_p4 = scmp.lt.s32.totalorder %s1518_s24, 1  ;;  %vm375_vm0 = vcmask 1043456   ;;  %vm362_vm1 = vcmask 64512   ;;  %v1531_v28 = vmov 0  }
  0x38   : > { %v341_v0 = vld [vmem:[%s1785_s2] sm:$0xf]  ;;  %v1378_v12 = vld [vmem:[%s1787_s4 + $0x4] ss:$8 sps:$4 sm:$0xff]   ;;  %v1381_v14 = vld [vmem:[%s1787_s4 + $0x14] ss:$8 sps:$4 sm:$0xff]  }
  0x39   : > { %s312_s18 = scalar_select %p311_p4, %s1518_s24, 1  ;;  %v460_v1 = vld [vmem:[%s1786_s3] sm:$0xf]  ;;  %1296 = vmatprep.subr.msk.bf16.mxu0 %vm375_vm0, %v341_v0  ;;  %v377_v2 = vsel %vm375_vm0, %v341_v0, 0  ;;  %v1379_v15 = vld [vmem:[%s1787_s4 + $0x10] ss:$8 sps:$4 sm:$0xff]  }
  0x3a   : > { %1297 = vmatprep.subr.msk.bf16.mxu1 %vm375_vm0, %v460_v1  ;;  %v494_v3 = vsel %vm375_vm0, %v460_v1, 0  ;;  %1277 = vmatpush3.bf16.msra.mxu0 %v377_v2  ;;  %v1376_v11 = vld [vmem:[%s1787_s4] ss:$8 sps:$4 sm:$0xff]   ;;  %v1384_v16 = vld [vmem:[%s1787_s4 + $0x24] ss:$8 sps:$4 sm:$0xff]   ;;  %v1404_v57 = vld [vmem:[#allocation4 + $0x50] sm:$0xff]  }
  0x3b   : > { %s1242_s19 = sshll.u32 %s312_s18, 5  ;;  %1287 = vmatpush3.bf16.msra.mxu1 %v494_v3  ;;  %670 = vmatprep.subr.bf16.mxu0 %v1378_v12  ;;  %v1382_v17 = vld [vmem:[%s1787_s4 + $0x20] ss:$8 sps:$4 sm:$0xff]   ;;  %v1387_v18 = vld [vmem:[%s1787_s4 + $0x34] ss:$8 sps:$4 sm:$0xff]   ;;  %s308_s15 = sand.u32 1, %s1510_s22  }
  0x3c   : > { %s315_s27 = scalar_lea.vmem %s1783_s0, %s1242_s19  ;;  %s320_s11 = scalar_lea.vmem %s1784_s1, %s1242_s19  ;;  %747 = vmatprep.subr.bf16.mxu1 %v1378_v12  ;;  %v1385_v19 = vld [vmem:[%s1787_s4 + $0x30] ss:$8 sps:$4 sm:$0xff]   ;;  %v1390_v20 = vld [vmem:[%s1787_s4 + $0x44] ss:$8 sps:$4 sm:$0xff]   ;;  %v1388_v21 = vld [vmem:[%s1787_s4 + $0x40] ss:$8 sps:$4 sm:$0xff]  }
  0x3d   : > { %v1368_v4 = vld [vmem:[%s315_s27] sm:$0xff]   ;;  %v1370_v6 = vld [vmem:[%s315_s27 + $0x8] sm:$0xff]   ;;  %v1372_v8 = vld [vmem:[%s315_s27 + $0x10] sm:$0xff]   ;;  %s1185_s20 = sshll.u32 %s308_s15, 3  ;;  %s1239_s14 = sshll.u32 %s1518_s24, 7 }
  0x3e   : > { %v1369_v5 = vld [vmem:[%s320_s11] sm:$0xff]   ;;  %1278 = vmatprep.mubr.msk.bf16.mxu0 %vm362_vm1, %v1368_v4  ;;  %v1371_v7 = vld [vmem:[%s320_s11 + $0x8] sm:$0xff]   ;;  %v1373_v9 = vld [vmem:[%s320_s11 + $0x10] sm:$0xff]   ;;  %s310_s28 = scalar_lea.vmem [#allocation7], %s1185_s20  ;;  %s1736_s8 = scalar_lea.hbm %s1789_s6, %s1239_s14 }
  0x3f   : > { %1288 = vmatprep.mubr.msk.bf16.mxu1 %vm362_vm1, %v1369_v5  ;;  %1279 = vmatmul.mubr.msk.bf16.vlgmr.msra.gmra.mrb[0].mxu0 %vm362_vm1, %v1370_v6  ;;  %v1374_v10 = vld [vmem:[%s315_s27 + $0x18] sm:$0xff]   ;;  %v1396_v24 = vld [vmem:[%s1787_s4 + $0x64] ss:$8 sps:$4 sm:$0xff]   ;;  %v1394_v25 = vld [vmem:[%s1787_s4 + $0x60] ss:$8 sps:$4 sm:$0xff]   ;;  %s1069_s27 = sshll.u32 %s310_s28, 4  ;;  %s1738_s27 = int_to_ptr.vmem [resolvable:$true] %s1069_s27 }
  0x40   : > { %1289 = vmatmul.mubr.msk.bf16.vlgmr.msra.gmra.mrb[0].mxu1 %vm362_vm1, %v1371_v7  ;;  %1282 = vmatprep.mubr.msk.bf16.mxu0 %vm362_vm1, %v1372_v8  ;;  %v1375_v13 = vld [vmem:[%s320_s11 + $0x18] sm:$0xff]   ;;  %v1400_v53 = vld [vmem:[#allocation4 + $0x40] sm:$0xff]   ;;  %v1402_v55 = vld [vmem:[#allocation4 + $0x48] sm:$0xff]   ;;  %s1056_s12 = scalar_lea.sflag [#allocation6], %s308_s15  ;;  %s1444_s13 = scalar_lea.vmem %s1738_s27, 128 }
  0x41   : > { %1292 = vmatprep.mubr.msk.bf16.mxu1 %vm362_vm1, %v1373_v9  ;;  %671 = vmatpush1.bf16.msra.mxu0 %v1376_v11  ;;  %v1393_v22 = vld [vmem:[%s1787_s4 + $0x54] ss:$8 sps:$4 sm:$0xff]   ;;  %v1391_v23 = vld [vmem:[%s1787_s4 + $0x50] ss:$8 sps:$4 sm:$0xff]   ;;  %v1401_v54 = vld [vmem:[#allocation4] sm:$0xff]   ;;  %p1445_p8 = scmp.ne.s32.totalorder %s1738_s27, %s1444_s13  ;;  %p1801_p10 = scmp.ne.s32.totalorder %s1794_s7, 0 }
  0x42   : > { %748 = vmatpush1.bf16.msra.mxu1 %v1376_v11  ;;  %672 = vmatprep.subr.bf16.mxu0 %v1381_v14  ;;  %v1399_v26 = vld [vmem:[%s1787_s4 + $0x74] ss:$8 sps:$4 sm:$0xff]   ;;  %v1397_v27 = vld [vmem:[%s1787_s4 + $0x70] ss:$8 sps:$4 sm:$0xff]   ;;  %v1403_v56 = vld [vmem:[#allocation4 + $0x8] sm:$0xff]   ;;  %s1532_s24 = smov [#allocation7]  }
  0x43   : > { %749 = vmatprep.subr.bf16.mxu1 %v1381_v14  ;;  %v1405_v58 = vld [vmem:[#allocation4 + $0x10] sm:$0xff]   ;;  %v1406_v59 = vld [vmem:[#allocation4 + $0x58] sm:$0xff]   ;;  %v1408_v61 = vld [vmem:[#allocation4 + $0x60] sm:$0xff]   ;;  %p1446_p11 = pnand %p1445_p8, %p1801_p10  ;;  %s1448_s16 = sshll.u32 %s1532_s24, 4  ;;  %s1449_s16 = int_to_ptr.vmem [resolvable:$false] %s1448_s16 }
  0x44   : > { %v1407_v60 = vld [vmem:[#allocation4 + $0x18] sm:$0xff]   ;;  %v1409_v62 = vld [vmem:[#allocation4 + $0x20] sm:$0xff]   ;;  %v1410_v63 = vld [vmem:[#allocation4 + $0x68] sm:$0xff]   ;;  %s1450_s17 = scalar_lea.vmem %s1449_s16, 256  ;;  %p1451_p1 = scmp.lt.s32.totalorder %s1738_s27, %s1449_s16 }
  0x45   : > { %673 = vmatpush1.bf16.msra.mxu0 %v1379_v15  ;;  %v1411_v0 = vld [vmem:[#allocation4 + $0x28] sm:$0xff]   ;;  %v1412_v1 = vld [vmem:[#allocation4 + $0x70] sm:$0xff]   ;;  %v1414_v3 = vld [vmem:[#allocation4 + $0x78] sm:$0xff]   ;;  %p1447_p13 = pneg %p1446_p11  ;;  %p1452_p3 = scmp.lt.s32.totalorder %s1450_s17, %s1444_s13 }
  0x46   : > { %750 = vmatpush1.bf16.msra.mxu1 %v1379_v15  ;;  %674 = vmatprep.subr.bf16.mxu0 %v1384_v16  ;;  %v1413_v2 = vld [vmem:[#allocation4 + $0x30] sm:$0xff]   ;;  %v1415_v4 = vld [vmem:[#allocation4 + $0x38] sm:$0xff]  }
  0x47   : > { %1283 = vmatmul.mubr.msk.bf16.gmra.mrb[4].mxu0 %vm362_vm1, %v1374_v10  ;;  %751 = vmatprep.subr.bf16.mxu1 %v1384_v16  ;;  %p1453_p5 = por %p1452_p3, %p1451_p1 }
  0x48   : > { %1293 = vmatmul.mubr.msk.bf16.gmra.mrb[4].mxu1 %vm362_vm1, %v1375_v13  ;;  %702 = vmatprep.mubr.bf16.mxu0 %v1531_v28 }
  0x49   : > { %675 = vmatpush1.bf16.msra.mxu0 %v1382_v17  ;;  %779 = vmatprep.mubr.bf16.mxu1 %v1531_v28  ;;  %p1454_p6 = pnand %p1453_p5, %p1447_p13 }
  0x4a   : > { %752 = vmatpush1.bf16.msra.mxu1 %v1382_v17  ;;  %676 = vmatprep.subr.bf16.mxu0 %v1387_v18 }
  0x4b   : > { %753 = vmatprep.subr.bf16.mxu1 %v1387_v18 }
  0x4d   : > { %677 = vmatpush1.bf16.msra.mxu0 %v1385_v19 }
  0x4e   : > { %754 = vmatpush1.bf16.msra.mxu1 %v1385_v19  ;;  %678 = vmatprep.subr.bf16.mxu0 %v1390_v20 }
  0x4f   : > { %755 = vmatprep.subr.bf16.mxu1 %v1390_v20 }
  0x51   : > { %679 = vmatpush1.bf16.msra.mxu0 %v1388_v21 }
  0x52   : > { %756 = vmatpush1.bf16.msra.mxu1 %v1388_v21  ;;  %680 = vmatprep.subr.bf16.mxu0 %v1393_v22 }
  0x53   : > { %757 = vmatprep.subr.bf16.mxu1 %v1393_v22 }
  0x55   : > { %681 = vmatpush1.bf16.msra.mxu0 %v1391_v23 }
  0x56   : > { %758 = vmatpush1.bf16.msra.mxu1 %v1391_v23  ;;  %682 = vmatprep.subr.bf16.mxu0 %v1396_v24 }
  0x57   : > { %759 = vmatprep.subr.bf16.mxu1 %v1396_v24 }
  0x59   : > { %683 = vmatpush1.bf16.msra.mxu0 %v1394_v25 }
  0x5a   : > { %760 = vmatpush1.bf16.msra.mxu1 %v1394_v25  ;;  %684 = vmatprep.subr.bf16.mxu0 %v1399_v26 }
  0x5b   : > { %761 = vmatprep.subr.bf16.mxu1 %v1399_v26 }
  0x5d   : > { %685 = vmatpush1.bf16.msra.mxu0 %v1397_v27 }
  0x5e   : > { %762 = vmatpush1.bf16.msra.mxu1 %v1397_v27  ;;  %1254 = vmatprep.subr.bf16.mxu0 %v1400_v53 }
 0x112   : > { %v1280_v29 = vpop.f32.mrb[0].mxu0 }
 0x113   : > { %v1290_v30 = vpop.f32.mrb[0].mxu1  ;;  %v413_v31 = vpop.f32.mrb[1].mxu0 }
 0x114   : > { %v530_v32 = vpop.f32.mrb[1].mxu1  ;;  %v1281_v33 = vpop.f32.mrb[2].mxu0 }
 0x115   : > { %v445_v34 = vpack.c.bf16 %v1281_v33, %v1280_v29  ;;  %v1291_v35 = vpop.f32.mrb[2].mxu1  ;;  %v416_v36 = vpop.f32.mrb[3].mxu0 }
 0x116   : > { %v562_v37 = vpack.c.bf16 %v1291_v35, %v1290_v30  ;;  %v444_v38 = vpack.c.bf16 %v416_v36, %v413_v31  ;;  %v533_v39 = vpop.f32.mrb[3].mxu1 }
 0x117   : > { %v561_v40 = vpack.c.bf16 %v533_v39, %v530_v32 }
 0x118   : > { %703 = vmatmul.mubr.bf16.vlgmr.msra.gmra.mrb[8].mxu0 %v444_v38 }
 0x119   : > { %780 = vmatmul.mubr.bf16.vlgmr.msra.gmra.mrb[8].mxu1 %v561_v40  ;;  %712 = vmatprep.mubr.bf16.mxu0 %v1531_v28 }
 0x11a   : > { %v1284_v41 = vpop.f32.mrb[4].mxu0  ;;  %789 = vmatprep.mubr.bf16.mxu1 %v1531_v28  ;;  %1255 = vmatpush3.bf16.msra.mxu0 %v1401_v54 }
 0x11b   : > { %v1294_v42 = vpop.f32.mrb[4].mxu1  ;;  %v429_v43 = vpop.f32.mrb[5].mxu0  ;;  %1256 = vmatprep.subr.bf16.mxu0 %v1402_v55 }
 0x11c   : > { %v546_v44 = vpop.f32.mrb[5].mxu1  ;;  %v1285_v45 = vpop.f32.mrb[6].mxu0 }
 0x11d   : > { %v447_v46 = vpack.c.bf16 %v1285_v45, %v1284_v41  ;;  %v1295_v47 = vpop.f32.mrb[6].mxu1  ;;  %v432_v48 = vpop.f32.mrb[7].mxu0 }
 0x11e   : > { %v564_v49 = vpack.c.bf16 %v1295_v47, %v1294_v42  ;;  %v446_v50 = vpack.c.bf16 %v432_v48, %v429_v43  ;;  %v549_v51 = vpop.f32.mrb[7].mxu1  ;;  %1257 = vmatpush3.bf16.msra.mxu0 %v1403_v56 }
 0x11f   : > { %v563_v52 = vpack.c.bf16 %v549_v51, %v546_v44  ;;  %1258 = vmatprep.subr.bf16.mxu0 %v1404_v57 }
 0x120   : > { %713 = vmatmul.mubr.bf16.gmra.mrb[12].mxu0 %v445_v34 }
 0x121   : > { %790 = vmatmul.mubr.bf16.gmra.mrb[12].mxu1 %v562_v37  ;;  %722 = vmatprep.mubr.bf16.mxu0 %v1531_v28 }
 0x122   : > { %799 = vmatprep.mubr.bf16.mxu1 %v1531_v28  ;;  %1259 = vmatpush3.bf16.msra.mxu0 %v1405_v58 }
 0x123   : > { %1260 = vmatprep.subr.bf16.mxu0 %v1406_v59 }
 0x126   : > { %1261 = vmatpush3.bf16.msra.mxu0 %v1407_v60 }
 0x127   : > { %1262 = vmatprep.subr.bf16.mxu0 %v1408_v61 }
 0x128   : > { %723 = vmatmul.mubr.bf16.gmra.mrb[16].mxu0 %v446_v50 }
 0x129   : > { %800 = vmatmul.mubr.bf16.gmra.mrb[16].mxu1 %v563_v52  ;;  %732 = vmatprep.mubr.bf16.mxu0 %v1531_v28 }
 0x12a   : > { %809 = vmatprep.mubr.bf16.mxu1 %v1531_v28  ;;  %1263 = vmatpush3.bf16.msra.mxu0 %v1409_v62 }
 0x12b   : > { %1264 = vmatprep.subr.bf16.mxu0 %v1410_v63 }
 0x12e   : > { %1265 = vmatpush3.bf16.msra.mxu0 %v1411_v0 }
 0x12f   : > { %1266 = vmatprep.subr.bf16.mxu0 %v1412_v1 }
 0x130   : > { %733 = vmatmul.mubr.bf16.gmra.mrb[20].mxu0 %v447_v46 }
 0x131   : > { %810 = vmatmul.mubr.bf16.gmra.mrb[20].mxu1 %v564_v49 }
 0x132   : > { %1267 = vmatpush3.bf16.msra.mxu0 %v1413_v2 }
 0x133   : > { %1268 = vmatprep.subr.bf16.mxu0 %v1414_v3 }
 0x136   : > { %1269 = vmatpush3.bf16.msra.mxu0 %v1415_v4 }
 0x1eb   : > { %v704_v5 = vpop.f32.mrb[8].mxu0 }
 0x1ec   : > { %v781_v6 = vpop.f32.mrb[8].mxu1  ;;  %v706_v7 = vpop.f32.mrb[9].mxu0 }
 0x1ed   : > { %v820_v8 = vmul.f32 %v781_v6, %v704_v5  ;;  %v852_v9 = vmul.f32 %v781_v6, %v706_v7  ;;  %v783_v10 = vpop.f32.mrb[9].mxu1  ;;  %v708_v11 = vpop.f32.mrb[10].mxu0 }
 0x1ee   : > { %v828_v12 = vmul.f32 %v783_v10, %v706_v7  ;;  %v844_v13 = vmul.f32 %v783_v10, %v704_v5  ;;  %v785_v14 = vpop.f32.mrb[10].mxu1  ;;  %v710_v15 = vpop.f32.mrb[11].mxu0 }
 0x1ef   : > { %v821_v16 = vmul.f32 %v785_v14, %v708_v11  ;;  %v853_v17 = vmul.f32 %v785_v14, %v710_v15  ;;  %v787_v18 = vpop.f32.mrb[11].mxu1 }
 0x1f0   : > { %v836_v19 = vsub.f32 %v820_v8, %v828_v12  ;;  %v860_v20 = vadd.f32 %v852_v9, %v844_v13  ;;  %v829_v21 = vmul.f32 %v787_v18, %v710_v15  ;;  %v845_v22 = vmul.f32 %v787_v18, %v708_v11 }
 0x1f2   : > { %v837_v23 = vsub.f32 %v821_v16, %v829_v21  ;;  %v861_v24 = vadd.f32 %v853_v17, %v845_v22 }
 0x1f3   : > { %v714_v25 = vpop.f32.mrb[12].mxu0 }
 0x1f4   : > { %v868_v26 = vadd.f32 %v837_v23, %v836_v19  ;;  %v875_v27 = vadd.f32 %v861_v24, %v860_v20  ;;  %v791_v28 = vpop.f32.mrb[12].mxu1  ;;  %v716_v29 = vpop.f32.mrb[13].mxu0 }
 0x1f5   : > { %v822_v30 = vmul.f32 %v791_v28, %v714_v25  ;;  %v854_v31 = vmul.f32 %v791_v28, %v716_v29  ;;  %v793_v32 = vpop.f32.mrb[13].mxu1  ;;  %v718_v33 = vpop.f32.mrb[14].mxu0 }
 0x1f6   : > { %v830_v34 = vmul.f32 %v793_v32, %v716_v29  ;;  %v846_v35 = vmul.f32 %v793_v32, %v714_v25  ;;  %v795_v36 = vpop.f32.mrb[14].mxu1  ;;  %v720_v37 = vpop.f32.mrb[15].mxu0 }
 0x1f7   : > { %v823_v38 = vmul.f32 %v795_v36, %v718_v33  ;;  %v855_v39 = vmul.f32 %v795_v36, %v720_v37  ;;  %v797_v40 = vpop.f32.mrb[15].mxu1 }
 0x1f8   : > { %v838_v41 = vsub.f32 %v822_v30, %v830_v34  ;;  %v862_v42 = vadd.f32 %v854_v31, %v846_v35  ;;  %v831_v43 = vmul.f32 %v797_v40, %v720_v37  ;;  %v847_v44 = vmul.f32 %v797_v40, %v718_v33 }
 0x1fa   : > { %v869_v45 = vadd.f32 %v868_v26, %v838_v41  ;;  %v876_v46 = vadd.f32 %v875_v27, %v862_v42  ;;  %v839_v47 = vsub.f32 %v823_v38, %v831_v43  ;;  %v863_v48 = vadd.f32 %v855_v39, %v847_v44 }
 0x1fb   : > { %v724_v49 = vpop.f32.mrb[16].mxu0 }
 0x1fc   : > { %v870_v50 = vadd.f32 %v869_v45, %v839_v47  ;;  %v877_v51 = vadd.f32 %v876_v46, %v863_v48  ;;  %v801_v52 = vpop.f32.mrb[16].mxu1  ;;  %v726_v53 = vpop.f32.mrb[17].mxu0 }
 0x1fd   : > { %v824_v54 = vmul.f32 %v801_v52, %v724_v49  ;;  %v856_v55 = vmul.f32 %v801_v52, %v726_v53  ;;  %v803_v56 = vpop.f32.mrb[17].mxu1  ;;  %v728_v57 = vpop.f32.mrb[18].mxu0 }
 0x1fe   : > { %v832_v58 = vmul.f32 %v803_v56, %v726_v53  ;;  %v848_v59 = vmul.f32 %v803_v56, %v724_v49  ;;  %v805_v60 = vpop.f32.mrb[18].mxu1  ;;  %v730_v61 = vpop.f32.mrb[19].mxu0 }
 0x1ff   : > { %v825_v62 = vmul.f32 %v805_v60, %v728_v57  ;;  %v857_v63 = vmul.f32 %v805_v60, %v730_v61  ;;  %v807_v0 = vpop.f32.mrb[19].mxu1 }
 0x200   : > { %v840_v1 = vsub.f32 %v824_v54, %v832_v58  ;;  %v864_v2 = vadd.f32 %v856_v55, %v848_v59  ;;  %v833_v3 = vmul.f32 %v807_v0, %v730_v61  ;;  %v849_v4 = vmul.f32 %v807_v0, %v728_v57 }
 0x202   : > { %v871_v5 = vadd.f32 %v870_v50, %v840_v1  ;;  %v878_v6 = vadd.f32 %v877_v51, %v864_v2  ;;  %v841_v7 = vsub.f32 %v825_v62, %v833_v3  ;;  %v865_v8 = vadd.f32 %v857_v63, %v849_v4 }
 0x203   : > { %v734_v9 = vpop.f32.mrb[20].mxu0 }
 0x204   : > { %v872_v10 = vadd.f32 %v871_v5, %v841_v7  ;;  %v879_v11 = vadd.f32 %v878_v6, %v865_v8  ;;  %v811_v12 = vpop.f32.mrb[20].mxu1  ;;  %v736_v13 = vpop.f32.mrb[21].mxu0 }
 0x205   : > { %v826_v14 = vmul.f32 %v811_v12, %v734_v9  ;;  %v858_v15 = vmul.f32 %v811_v12, %v736_v13  ;;  %v813_v16 = vpop.f32.mrb[21].mxu1  ;;  %v738_v17 = vpop.f32.mrb[22].mxu0 }
 0x206   : > { %v834_v18 = vmul.f32 %v813_v16, %v736_v13  ;;  %v850_v19 = vmul.f32 %v813_v16, %v734_v9  ;;  %v815_v20 = vpop.f32.mrb[22].mxu1  ;;  %v740_v21 = vpop.f32.mrb[23].mxu0 }
 0x207   : > { %v827_v22 = vmul.f32 %v815_v20, %v738_v17  ;;  %v859_v23 = vmul.f32 %v815_v20, %v740_v21  ;;  %v817_v24 = vpop.f32.mrb[23].mxu1 }
 0x208   : > { %v842_v25 = vsub.f32 %v826_v14, %v834_v18  ;;  %v866_v26 = vadd.f32 %v858_v15, %v850_v19  ;;  %v835_v27 = vmul.f32 %v817_v24, %v740_v21  ;;  %v851_v28 = vmul.f32 %v817_v24, %v738_v17 }
 0x20a   : > { %v873_v29 = vadd.f32 %v872_v10, %v842_v25  ;;  %v880_v30 = vadd.f32 %v879_v11, %v866_v26  ;;  %v843_v31 = vsub.f32 %v827_v22, %v835_v27  ;;  %v867_v32 = vadd.f32 %v859_v23, %v851_v28 }
 0x20c   : > { %v874_v33 = vadd.f32 %v873_v29, %v843_v31  ;;  %v881_v34 = vadd.f32 %v880_v30, %v867_v32 }
 0x20e   : > { %v883_v35 = vpack.c.bf16 %v874_v33, %v874_v33  ;;  %v884_v36 = vpack.c.bf16 %v881_v34, %v881_v34 }
 0x210   : > { %1045 = vmatprep.mubr.bf16.mxu0 %v884_v36 }
 0x211   : > { %1046 = vmatmul.mubr.bf16.vlgmr.msra.gmra.mrb[24].mxu0 %v883_v35 }
 0x2e4   : > { %v1270_v37 = vpop.f32.mrb[24].mxu0 }
 0x2e5   : > { %v1271_v38 = vpop.f32.mrb[25].mxu0 }
 0x2e6   : > { %v1272_v39 = vadd.f32 %v1271_v38, %v1270_v37  ;;  %v1273_v40 = vpop.f32.mrb[26].mxu0 }
 0x2e7   : > { %v1274_v41 = vpop.f32.mrb[27].mxu0 }
 0x2e8   : > { %1054 = vst [vmem:[%s310_s28] sm:$0xff] %v1272_v39 }
 0x2e9   : > { %1457 = shalt.err (!%p1454_p6)
}
 0x2ea   : > { %s1458_s18 = scalar_lea.hbm %s1736_s8, 128  ;;  %s1462_s20 = scalar_lea.hbm %s1789_s6, 256 }
 0x2eb   : > { %p1459_p7 = scmp.ne.s32.totalorder %s1736_s8, %s1458_s18  ;;  %p1463_p0 = scmp.lt.u32.totalorder %s1736_s8, %s1789_s6 }
 0x2ec   : > { %p1464_p2 = scmp.lt.u32.totalorder %s1462_s20, %s1458_s18  ;;  %p1466_p8 = scmp.lt.u32.totalorder %s1458_s18, %s1736_s8 }
 0x2ed   : > { %p1460_p9 = pnand %p1459_p7, %p1801_p10 }
 0x2ee   : > { %p1465_p4 = por %p1464_p2, %p1463_p0 }
 0x2ef   : > { %p1461_p12 = pneg %p1460_p9 }
 0x2f0   : > { %p1467_p11 = por %p1466_p8, %p1465_p4 }
 0x2f2   : > { %p1468_p13 = pnand %p1467_p11, %p1461_p12 }
 0x2f4   : > { %1471 = shalt.err (!%p1468_p13)
}
 0x2f5   : > { %1302 = dma.vmem_to_hbm [thread:$0]  (%p1801_p10), %s1738_s27, 128, %s1736_s8, %s1056_s12  }
 0x2f6 PF: > { %p1314_p1 = scmp.ge.s32.totalorder %s1526_s26, 2  ;;  %s1081_s30 = sand.u32 1, %s1506_s21  }
 0x2f7   : > { %p1802_p3 = scmp.ne.s32.totalorder %s1795_s9, 0  ;;  %s1082_s11 = scalar_lea.sflag [#allocation6], %s1081_s30 }
 0x2f9   : > { %p1309_p5 = pnand %p1314_p1, %p1802_p3 }
 0x2fb   : > { %1501 = dma.done.wait (!%p1309_p5), %s1082_s11, 128  }
 0x2fc   : > { %1503 = vsyncadd (!%p1309_p5), %s1082_s11, 4294967168  ;;  %s20_s26 = sadd.s32 1, %s1526_s26   ;;  %s1803_s21 = smov %s1510_s22 }
 0x2fd   : > { %p17_p6 = scmp.ge.s32.totalorder %s20_s26, 4   ;;  %s1804_s22 = smov %s1514_s23 }
 0x2fe   : > { %s1805_s23 = smov %s1621_s10  ;;  %s1806_s24 = smov %s1522_s25 }
 0x2ff   : > { %s1807_s25 = smov %s1809_s29  ;;  %19 = sbr.rel (!%p17_p6) target bundleno = 5 (0x5), region = 95 }
 0x306   :  { %1087 = vsyncpa [#allocation5], 1 }
 0x307   :  { %1089 = vsyncpa [#allocation5 + $0x1], 1 }
 0x308   :  { %1090 = vsyncpa [#allocation6], 1 }
 0x309   :  { %1092 = vsyncpa [#allocation6 + $0x1], 1 }

</bundles_post_ra>
